<compile_context>
chip_gen: v6e
topology: v6e:2x2x1
jax: 0.10.0
libtpu: 0.0.40
codegen_flags: <defaults>
</compile_context>

<pallas_src>
import functools

import jax
import jax.numpy as jnp
from jax import lax
from jax.experimental import pallas as pl
from jax.experimental.pallas import tpu as pltpu


def _round_up(x, m):
    return (x + m - 1) // m * m


def _pad_axes(arr, targets):
    pads = [(0, t - s) for s, t in zip(arr.shape, targets)]
    if any(p[1] for p in pads):
        arr = jnp.pad(arr, pads)
    return arr


def _tgcn_kernel(x_ref, w_ref, a_ref, beff_ref, o_ref, *, project_first):
    """One (w-tile, batch-tile) grid step: out = beff + sum_k W_k @ x @ A_k."""
    bn, c_in, tv = x_ref.shape
    k_size, c_out, _ = w_ref.shape
    tn = a_ref.shape[-1]
    cdt = x_ref.dtype

    x = x_ref[...]                                       # (bn, c_in, tv)
    acc = jnp.zeros((bn, c_out, tn), jnp.float32)

    if project_first:
        # (W_k @ x) @ A_k : big matmul has M = bn*c_out (when c_out < c_in).
        for k in range(k_size):
            wb = jnp.broadcast_to(w_ref[k][None], (bn, c_out, c_in))
            y = lax.dot_general(
                wb, x, (((2,), (1,)), ((0,), (0,))),
                preferred_element_type=jnp.float32)       # (bn, c_out, tv)
            y2 = y.astype(cdt).reshape(bn * c_out, tv)
            acc += jnp.dot(
                y2, a_ref[k],
                preferred_element_type=jnp.float32).reshape(bn, c_out, tn)
    else:
        # W_k @ (x @ A_k) : big matmul has M = bn*c_in (when c_in <= c_out).
        x2 = x.reshape(bn * c_in, tv)                     # leading-dim merge
        for k in range(k_size):
            z = jnp.dot(x2, a_ref[k],
                        preferred_element_type=jnp.float32)  # (bn*c_in, tn)
            z3 = z.astype(cdt).reshape(bn, c_in, tn)
            wb = jnp.broadcast_to(w_ref[k][None], (bn, c_out, c_in))
            acc += lax.dot_general(
                wb, z3, (((2,), (1,)), ((0,), (0,))),
                preferred_element_type=jnp.float32)       # (bn, c_out, tn)

    o_ref[...] = (acc + beff_ref[...][None]).astype(o_ref.dtype)


@functools.partial(
    jax.jit,
    static_argnames=("kernel_size", "block_n", "block_w", "compute_dtype"))
def conv_temporal_graphical(x, A, weight, bias, *, kernel_size,
                            block_n=8, block_w=512,
                            compute_dtype=jnp.bfloat16):
    """Pallas forward pass.

    Args:
      x:      (N, C_in, 1, TV)   -- PyTorch NCHW input (temporal axis folded).
      A:      (K, TV, TV)
      weight: (K*C_out, C_in, 1, 1)   -- Conv2d 1x1 weight.
      bias:   (K*C_out,)
    Returns:
      (out, A) with out of shape (N, C_out, 1, TV) in x.dtype.
    """
    K = kernel_size
    N, C_in, one, TV = x.shape
    assert one == 1, "temporal axis must already be folded into TV"
    assert A.shape == (K, TV, TV)
    KC, C_in_w, kt, kv = weight.shape
    assert C_in_w == C_in and kt == 1 and kv == 1 and KC % K == 0
    C_out = KC // K
    out_dtype = x.dtype

    # ---- plain-JAX glue: squeeze conv axis, split K, fold bias into beff ----
    x_nv = x[:, :, 0, :].astype(jnp.float32)                    # (N, C_in, TV)
    w_k = weight[:, :, 0, 0].reshape(K, C_out, C_in).astype(jnp.float32)
    b_k = bias.reshape(K, C_out).astype(jnp.float32)
    # (W x + b) @ A == (W x) @ A + b (1^T A): fold bias with A's column sums.
    beff = jnp.einsum("ko,kw->ow", b_k,
                      jnp.sum(A.astype(jnp.float32), axis=1))   # (C_out, TV)

    # ---- hardware-aligned padding / tiling ----
    sub = 16                                  # sublane multiple (bf16 packing)
    bn = max(1, min(block_n, N))
    tn = max(128, _round_up(min(block_w, _round_up(TV, 128)), 128))
    TVp = _round_up(_round_up(TV, 128), tn)
    Np = _round_up(N, bn)
    C_in_p = _round_up(C_in, sub)
    C_out_p = _round_up(C_out, sub)

    x_p = _pad_axes(x_nv, (Np, C_in_p, TVp)).astype(compute_dtype)
    w_p = _pad_axes(w_k, (K, C_out_p, C_in_p)).astype(compute_dtype)
    a_p = _pad_axes(A.astype(jnp.float32), (K, TVp, TVp)).astype(compute_dtype)
    beff_p = _pad_axes(beff, (C_out_p, TVp))                     # stays f32

    project_first = C_in > C_out
    num_n = Np // bn
    num_j = TVp // tn

    cbytes = jnp.dtype(compute_dtype).itemsize
    obytes = jnp.dtype(out_dtype).itemsize
    block_bytes = 2 * (bn * C_in_p * TVp * cbytes          # x (double-buffered)
                       + K * TVp * tn * cbytes             # A tile
                       + K * C_out_p * C_in_p * cbytes     # W
                       + C_out_p * tn * 4                  # folded bias
                       + bn * C_out_p * tn * obytes)       # out tile
    block_bytes += 4 * bn * (C_in_p + C_out_p) * tn * 4    # f32 intermediates
    vmem_limit = int(min(max(block_bytes + (8 << 20), 32 << 20), 96 << 20))

    kernel = functools.partial(_tgcn_kernel, project_first=project_first)

    out_p = pl.pallas_call(
        kernel,
        out_shape=jax.ShapeDtypeStruct((Np, C_out_p, TVp), out_dtype),
        grid=(num_j, num_n),                   # n innermost -> A tile resident
        in_specs=[
            pl.BlockSpec((bn, C_in_p, TVp), lambda j, n: (n, 0, 0)),
            pl.BlockSpec((K, C_out_p, C_in_p), lambda j, n: (0, 0, 0)),
            pl.BlockSpec((K, TVp, tn), lambda j, n: (0, 0, j)),
            pl.BlockSpec((C_out_p, tn), lambda j, n: (0, j)),
        ],
        out_specs=pl.BlockSpec((bn, C_out_p, tn), lambda j, n: (n, 0, j)),
        compiler_params=pltpu.CompilerParams(
            dimension_semantics=("parallel", "parallel"),
            vmem_limit_bytes=vmem_limit,
        ),
    )(x_p, w_p, a_p, beff_p)

    out = out_p[:N, :C_out, :TV][:, :, None, :]           # (N, C_out, 1, TV)
    return out, A


def _reference(x, A, weight, bias, kernel_size):
    """Pure-JAX f32 reference mirroring the PyTorch forward."""
    K = kernel_size
    N, C_in, _, TV = x.shape
    C_out = weight.shape[0] // K
    w = weight[:, :, 0, 0]
    y = jnp.einsum("oc,ncv->nov", w, x[:, :, 0, :]) + bias[None, :, None]
    y = y.reshape(N, K, C_out, 1, TV)
    out = jnp.einsum("nkctv,kvw->nctw", y, A)
    return out, A


def _make_inputs(key, N, C_in, C_out, K, TV):
    kx, ka, kw, kb = jax.random.split(key, 4)
    x = jax.random.normal(kx, (N, C_in, 1, TV), dtype=jnp.float32)
    A = jax.random.normal(ka, (K, TV, TV), dtype=jnp.float32)
    bound = 1.0 / jnp.sqrt(C_in)            # Conv2d default init bounds
    weight = jax.random.uniform(kw, (C_out * K, C_in, 1, 1), jnp.float32,
                                -bound, bound)
    bias = jax.random.uniform(kb, (C_out * K,), jnp.float32, -bound, bound)
    return x, A, weight, bias


def _rel_err(out, ref):
    return jnp.linalg.norm(out - ref) / jnp.maximum(jnp.linalg.norm(ref), 1e-6)


if __name__ == "__main__":
    key = jax.random.PRNGKey(0)
    k1, k2 = jax.random.split(key)

    # Case 1: C_in < C_out -> reassociated W @ (x @ A) path.
    N, C_in, C_out, K, T, V = 2, 4, 8, 3, 4, 4
    TV = T * V
    x, A, weight, bias = _make_inputs(k1, N, C_in, C_out, K, TV)
    ref_out, _ = _reference(x, A, weight, bias, K)

    out_f32, _ = conv_temporal_graphical(
        x, A, weight, bias, kernel_size=K, compute_dtype=jnp.float32)
    out_f32 = jax.block_until_ready(out_f32)
    assert out_f32.shape == (N, C_out, 1, TV)
    assert _rel_err(out_f32, ref_out) < 3e-2, "f32 path mismatch vs reference"

    out_bf16, _ = conv_temporal_graphical(
        x, A, weight, bias, kernel_size=K, compute_dtype=jnp.bfloat16)
    out_bf16 = jax.block_until_ready(out_bf16)
    assert out_bf16.shape == (N, C_out, 1, TV)
    assert _rel_err(out_bf16, ref_out) < 3e-2, "bf16 path mismatch vs reference"

    # Case 2: C_in > C_out -> (W @ x) @ A path.
    N2, C_in2, C_out2, K2, TV2 = 2, 8, 4, 2, 16
    x2, A2, w2, b2 = _make_inputs(k2, N2, C_in2, C_out2, K2, TV2)
    ref2, _ = _reference(x2, A2, w2, b2, K2)
    out2, _ = conv_temporal_graphical(x2, A2, w2, b2, kernel_size=K2)
    out2 = jax.block_until_ready(out2)
    assert out2.shape == (N2, C_out2, 1, TV2)
    assert _rel_err(out2, ref2) < 3e-2, "project-first path mismatch"

    print("KERNEL_OK")
</pallas_src>

<mosaic_0001>
module attributes {stable_mosaic.version = 11 : i64} {
  func.func @_tgcn_kernel(%arg0: i32, %arg1: i32, %arg2: memref<2x16x128xf32, #tpu.memory_space<vmem>>, %arg3: memref<3x16x16xf32, #tpu.memory_space<vmem>>, %arg4: memref<3x128x128xf32, #tpu.memory_space<vmem>>, %arg5: memref<16x128xf32, #tpu.memory_space<vmem>>, %arg6: memref<2x16x128xf32, #tpu.memory_space<vmem>>) attributes {dimension_semantics = [#tpu.dimension_semantics<parallel>, #tpu.dimension_semantics<parallel>], iteration_bounds = array<i64: 1, 1>, scalar_prefetch = 0 : i64, scratch_operands = 0 : i64, tpu.core_type = #tpu.core_type<tc>, window_params = [{transform_indices = @transform_0, window_bounds = array<i64: 2, 16, 128>}, {pipeline_mode = #tpu.pipeline_mode<synchronous>, transform_indices = @transform_1, window_bounds = array<i64: 3, 16, 16>}, {transform_indices = @transform_2, window_bounds = array<i64: 3, 128, 128>}, {transform_indices = @transform_3, window_bounds = array<i64: 16, 128>}, {transform_indices = @transform_4, window_bounds = array<i64: 2, 16, 128>}]} {
    %c0 = arith.constant 0 : index
    %c0_0 = arith.constant 0 : index
    %c0_1 = arith.constant 0 : index
    %0 = vector.load %arg2[%c0, %c0_0, %c0_1] : memref<2x16x128xf32, #tpu.memory_space<vmem>>, vector<2x16x128xf32>
    %cst = arith.constant 0.000000e+00 : f32
    %1 = vector.broadcast %cst : f32 to vector<2x16x128xf32>
    %2 = vector.shape_cast %0 : vector<2x16x128xf32> to vector<32x128xf32>
    %c0_2 = arith.constant 0 : index
    %c0_3 = arith.constant 0 : index
    %c0_4 = arith.constant 0 : index
    %3 = vector.load %arg4[%c0_2, %c0_3, %c0_4] : memref<3x128x128xf32, #tpu.memory_space<vmem>>, vector<1x128x128xf32>
    %4 = vector.shape_cast %3 : vector<1x128x128xf32> to vector<128x128xf32>
    %cst_5 = arith.constant dense<0.000000e+00> : vector<32x128xf32>
    %5 = tpu.matmul %2, %4, %cst_5 {dimension_numbers = #tpu.dot_dimension_numbers<[1], [0], [0], [1], [0, 0, 1, 1], [], []>} : vector<32x128xf32>, vector<128x128xf32>, vector<32x128xf32> -> vector<32x128xf32>
    %6 = vector.shape_cast %5 : vector<32x128xf32> to vector<2x16x128xf32>
    %c0_6 = arith.constant 0 : index
    %c0_7 = arith.constant 0 : index
    %c0_8 = arith.constant 0 : index
    %7 = vector.load %arg3[%c0_6, %c0_7, %c0_8] : memref<3x16x16xf32, #tpu.memory_space<vmem>>, vector<1x16x16xf32>
    %8 = vector.shape_cast %7 : vector<1x16x16xf32> to vector<16x16xf32>
    %9 = vector.shape_cast %8 : vector<16x16xf32> to vector<1x16x16xf32>
    %10 = vector.shape_cast %9 : vector<1x16x16xf32> to vector<1x16x16xf32>
    %11 = vector.broadcast %10 : vector<1x16x16xf32> to vector<2x16x16xf32>
    %cst_9 = arith.constant dense<0.000000e+00> : vector<2x16x128xf32>
    %12 = tpu.matmul %11, %6, %cst_9 {dimension_numbers = #tpu.dot_dimension_numbers<[2], [1], [1], [2], [0, 0, 0, 1, 1, 2], [0], [0]>} : vector<2x16x16xf32>, vector<2x16x128xf32>, vector<2x16x128xf32> -> vector<2x16x128xf32>
    %13 = arith.addf %1, %12 : vector<2x16x128xf32>
    %c1 = arith.constant 1 : index
    %c0_10 = arith.constant 0 : index
    %c0_11 = arith.constant 0 : index
    %14 = vector.load %arg4[%c1, %c0_10, %c0_11] : memref<3x128x128xf32, #tpu.memory_space<vmem>>, vector<1x128x128xf32>
    %15 = vector.shape_cast %14 : vector<1x128x128xf32> to vector<128x128xf32>
    %cst_12 = arith.constant dense<0.000000e+00> : vector<32x128xf32>
    %16 = tpu.matmul %2, %15, %cst_12 {dimension_numbers = #tpu.dot_dimension_numbers<[1], [0], [0], [1], [0, 0, 1, 1], [], []>} : vector<32x128xf32>, vector<128x128xf32>, vector<32x128xf32> -> vector<32x128xf32>
    %17 = vector.shape_cast %16 : vector<32x128xf32> to vector<2x16x128xf32>
    %c1_13 = arith.constant 1 : index
    %c0_14 = arith.constant 0 : index
    %c0_15 = arith.constant 0 : index
    %18 = vector.load %arg3[%c1_13, %c0_14, %c0_15] : memref<3x16x16xf32, #tpu.memory_space<vmem>>, vector<1x16x16xf32>
    %19 = vector.shape_cast %18 : vector<1x16x16xf32> to vector<16x16xf32>
    %20 = vector.shape_cast %19 : vector<16x16xf32> to vector<1x16x16xf32>
    %21 = vector.shape_cast %20 : vector<1x16x16xf32> to vector<1x16x16xf32>
    %22 = vector.broadcast %21 : vector<1x16x16xf32> to vector<2x16x16xf32>
    %cst_16 = arith.constant dense<0.000000e+00> : vector<2x16x128xf32>
    %23 = tpu.matmul %22, %17, %cst_16 {dimension_numbers = #tpu.dot_dimension_numbers<[2], [1], [1], [2], [0, 0, 0, 1, 1, 2], [0], [0]>} : vector<2x16x16xf32>, vector<2x16x128xf32>, vector<2x16x128xf32> -> vector<2x16x128xf32>
    %24 = arith.addf %13, %23 : vector<2x16x128xf32>
    %c2 = arith.constant 2 : index
    %c0_17 = arith.constant 0 : index
    %c0_18 = arith.constant 0 : index
    %25 = vector.load %arg4[%c2, %c0_17, %c0_18] : memref<3x128x128xf32, #tpu.memory_space<vmem>>, vector<1x128x128xf32>
    %26 = vector.shape_cast %25 : vector<1x128x128xf32> to vector<128x128xf32>
    %cst_19 = arith.constant dense<0.000000e+00> : vector<32x128xf32>
    %27 = tpu.matmul %2, %26, %cst_19 {dimension_numbers = #tpu.dot_dimension_numbers<[1], [0], [0], [1], [0, 0, 1, 1], [], []>} : vector<32x128xf32>, vector<128x128xf32>, vector<32x128xf32> -> vector<32x128xf32>
    %28 = vector.shape_cast %27 : vector<32x128xf32> to vector<2x16x128xf32>
    %c2_20 = arith.constant 2 : index
    %c0_21 = arith.constant 0 : index
    %c0_22 = arith.constant 0 : index
    %29 = vector.load %arg3[%c2_20, %c0_21, %c0_22] : memref<3x16x16xf32, #tpu.memory_space<vmem>>, vector<1x16x16xf32>
    %30 = vector.shape_cast %29 : vector<1x16x16xf32> to vector<16x16xf32>
    %31 = vector.shape_cast %30 : vector<16x16xf32> to vector<1x16x16xf32>
    %32 = vector.shape_cast %31 : vector<1x16x16xf32> to vector<1x16x16xf32>
    %33 = vector.broadcast %32 : vector<1x16x16xf32> to vector<2x16x16xf32>
    %cst_23 = arith.constant dense<0.000000e+00> : vector<2x16x128xf32>
    %34 = tpu.matmul %33, %28, %cst_23 {dimension_numbers = #tpu.dot_dimension_numbers<[2], [1], [1], [2], [0, 0, 0, 1, 1, 2], [0], [0]>} : vector<2x16x16xf32>, vector<2x16x128xf32>, vector<2x16x128xf32> -> vector<2x16x128xf32>
    %35 = arith.addf %24, %34 : vector<2x16x128xf32>
    %c0_24 = arith.constant 0 : index
    %c0_25 = arith.constant 0 : index
    %36 = vector.load %arg5[%c0_24, %c0_25] : memref<16x128xf32, #tpu.memory_space<vmem>>, vector<16x128xf32>
    %37 = vector.shape_cast %36 : vector<16x128xf32> to vector<1x16x128xf32>
    %38 = vector.broadcast %37 : vector<1x16x128xf32> to vector<2x16x128xf32>
    %39 = arith.addf %35, %38 : vector<2x16x128xf32>
    %c0_26 = arith.constant 0 : index
    %c0_27 = arith.constant 0 : index
    %c0_28 = arith.constant 0 : index
    %40 = vector.load %arg6[%c0_26, %c0_27, %c0_28] : memref<2x16x128xf32, #tpu.memory_space<vmem>>, vector<2x16x128xf32>
    tpu.vector_store %arg6[%c0_26, %c0_27, %c0_28], %39 {strides = array<i32>} : memref<2x16x128xf32, #tpu.memory_space<vmem>>, vector<2x16x128xf32>,
    return
  }
  func.func @transform_0(%arg0: i32, %arg1: i32) -> (i32, i32, i32) {
    %c0_i32 = arith.constant 0 : i32
    %c0_i32_0 = arith.constant 0 : i32
    %c0_i32_1 = arith.constant 0 : i32
    return %arg1, %c0_i32, %c0_i32_0 : i32, i32, i32
  }
  func.func @transform_1(%arg0: i32, %arg1: i32) -> (i32, i32, i32) {
    %c0_i32 = arith.constant 0 : i32
    %c0_i32_0 = arith.constant 0 : i32
    %c0_i32_1 = arith.constant 0 : i32
    %c0_i32_2 = arith.constant 0 : i32
    return %c0_i32, %c0_i32_0, %c0_i32_1 : i32, i32, i32
  }
  func.func @transform_2(%arg0: i32, %arg1: i32) -> (i32, i32, i32) {
    %c0_i32 = arith.constant 0 : i32
    %c0_i32_0 = arith.constant 0 : i32
    %c0_i32_1 = arith.constant 0 : i32
    return %c0_i32, %c0_i32_0, %arg0 : i32, i32, i32
  }
  func.func @transform_3(%arg0: i32, %arg1: i32) -> (i32, i32) {
    %c0_i32 = arith.constant 0 : i32
    %c0_i32_0 = arith.constant 0 : i32
    return %c0_i32, %arg0 : i32, i32
  }
  func.func @transform_4(%arg0: i32, %arg1: i32) -> (i32, i32, i32) {
    %c0_i32 = arith.constant 0 : i32
    %c0_i32_0 = arith.constant 0 : i32
    return %arg1, %c0_i32, %arg0 : i32, i32, i32
  }
}

</mosaic_0001>

<bundles_post_ra>
// kernel: conv_temporal_graphical.1
= control target key start
LH: loop header
LB: loop body
LE: loop exit
PB: predicated region body
PF: predicated region fallthrough
CT: control target
= control target key end

     0   :  { %vm229_vm0 = vcmask 130048   ;;  %s1338_s2 = inlined_call_operand.vmem [shape: f32[3,128,128], index: 2, kind: input, shape index: {}]   ;;  %s1339_s0 = inlined_call_operand.vmem [shape: f32[2,16,128], index: 0, kind: input, shape index: {}]   ;;  %s1340_s1 = inlined_call_operand.vmem [shape: f32[3,16,16], index: 1, kind: input, shape index: {}]   ;;  %s1341_s3 = inlined_call_operand.vmem [shape: f32[16,128], index: 3, kind: input, shape index: {}]   ;;  %s1342_s4 = inlined_call_operand.vmem [shape: f32[2,16,128], index: 4, kind: output, shape index: {}]  }
   0x1   :  { %v36_v0 = vld [vmem:[%s1338_s2 + $0x78] sm:$0xff]  ;;  %v35_v2 = vld [vmem:[%s1338_s2 + $0x70] sm:$0xff]  ;;  %v34_v4 = vld [vmem:[%s1338_s2 + $0x68] sm:$0xff] }
   0x2   :  { %v836_v1 = vld [vmem:[%s1338_s2 + $0xf8] sm:$0xff]  ;;  %953 = vmatprep.subr.mxu0 %v36_v0  ;;  %v835_v3 = vld [vmem:[%s1338_s2 + $0xf0] sm:$0xff]  ;;  %v834_v5 = vld [vmem:[%s1338_s2 + $0xe8] sm:$0xff] }
   0x3   :  { %991 = vmatprep.subr.mxu1 %v836_v1  ;;  %954 = vmatpush3.msra.mxu0 %v36_v0  ;;  %v33_v6 = vld [vmem:[%s1338_s2 + $0x60] sm:$0xff]  ;;  %v32_v8 = vld [vmem:[%s1338_s2 + $0x58] sm:$0xff]  ;;  %v31_v10 = vld [vmem:[%s1338_s2 + $0x50] sm:$0xff] }
   0x4   :  { %992 = vmatpush3.msra.mxu1 %v836_v1  ;;  %955 = vmatprep.subr.mxu0 %v35_v2  ;;  %v833_v7 = vld [vmem:[%s1338_s2 + $0xe0] sm:$0xff]  ;;  %v832_v9 = vld [vmem:[%s1338_s2 + $0xd8] sm:$0xff]  ;;  %v831_v11 = vld [vmem:[%s1338_s2 + $0xd0] sm:$0xff] }
   0x5   :  { %993 = vmatprep.subr.mxu1 %v835_v3  ;;  %956 = vmatpush3.msra.mxu0 %v35_v2  ;;  %v30_v12 = vld [vmem:[%s1338_s2 + $0x48] sm:$0xff]  ;;  %v29_v14 = vld [vmem:[%s1338_s2 + $0x40] sm:$0xff]  ;;  %v28_v16 = vld [vmem:[%s1338_s2 + $0x38] sm:$0xff] }
   0x6   :  { %994 = vmatpush3.msra.mxu1 %v835_v3  ;;  %957 = vmatprep.subr.mxu0 %v34_v4  ;;  %v830_v13 = vld [vmem:[%s1338_s2 + $0xc8] sm:$0xff]  ;;  %v829_v15 = vld [vmem:[%s1338_s2 + $0xc0] sm:$0xff]  ;;  %v828_v17 = vld [vmem:[%s1338_s2 + $0xb8] sm:$0xff] }
   0x7   :  { %995 = vmatprep.subr.mxu1 %v834_v5  ;;  %958 = vmatpush3.msra.mxu0 %v34_v4  ;;  %v27_v18 = vld [vmem:[%s1338_s2 + $0x30] sm:$0xff]  ;;  %v26_v20 = vld [vmem:[%s1338_s2 + $0x28] sm:$0xff]  ;;  %v25_v22 = vld [vmem:[%s1338_s2 + $0x20] sm:$0xff] }
   0x8   :  { %996 = vmatpush3.msra.mxu1 %v834_v5  ;;  %959 = vmatprep.subr.mxu0 %v33_v6  ;;  %v827_v19 = vld [vmem:[%s1338_s2 + $0xb0] sm:$0xff]  ;;  %v826_v21 = vld [vmem:[%s1338_s2 + $0xa8] sm:$0xff]  ;;  %v825_v23 = vld [vmem:[%s1338_s2 + $0xa0] sm:$0xff] }
   0x9   :  { %997 = vmatprep.subr.mxu1 %v833_v7  ;;  %960 = vmatpush3.msra.mxu0 %v33_v6  ;;  %v24_v24 = vld [vmem:[%s1338_s2 + $0x18] sm:$0xff]  ;;  %v23_v26 = vld [vmem:[%s1338_s2 + $0x10] sm:$0xff]  ;;  %v22_v28 = vld [vmem:[%s1338_s2 + $0x8] sm:$0xff] }
   0xa   :  { %998 = vmatpush3.msra.mxu1 %v833_v7  ;;  %961 = vmatprep.subr.mxu0 %v32_v8  ;;  %v824_v25 = vld [vmem:[%s1338_s2 + $0x98] sm:$0xff]  ;;  %v823_v27 = vld [vmem:[%s1338_s2 + $0x90] sm:$0xff]  ;;  %v822_v29 = vld [vmem:[%s1338_s2 + $0x88] sm:$0xff] }
   0xb   :  { %999 = vmatprep.subr.mxu1 %v832_v9  ;;  %962 = vmatpush3.msra.mxu0 %v32_v8  ;;  %v21_v30 = vld [vmem:[%s1338_s2] sm:$0xff]  ;;  %v18_v33 = vld [vmem:[%s1339_s0 + $0x8] sm:$0xff]  ;;  %v862_v34 = vld [vmem:[%s1338_s2 + $0x178] sm:$0xff] }
   0xc   :  { %1000 = vmatpush3.msra.mxu1 %v832_v9  ;;  %963 = vmatprep.subr.mxu0 %v31_v10  ;;  %v821_v31 = vld [vmem:[%s1338_s2 + $0x80] sm:$0xff]  ;;  %v19_v35 = vld [vmem:[%s1339_s0 + $0x10] sm:$0xff]  ;;  %v20_v37 = vld [vmem:[%s1339_s0 + $0x18] sm:$0xff] }
   0xd   :  { %1001 = vmatprep.subr.mxu1 %v831_v11  ;;  %964 = vmatpush3.msra.mxu0 %v31_v10  ;;  %v17_v32 = vld [vmem:[%s1339_s0] sm:$0xff]  ;;  %v861_v36 = vld [vmem:[%s1338_s2 + $0x170] sm:$0xff]  ;;  %v860_v38 = vld [vmem:[%s1338_s2 + $0x168] sm:$0xff] }
   0xe   :  { %1002 = vmatpush3.msra.mxu1 %v831_v11  ;;  %965 = vmatprep.subr.mxu0 %v30_v12  ;;  %v859_v39 = vld [vmem:[%s1338_s2 + $0x160] sm:$0xff]  ;;  %v858_v40 = vld [vmem:[%s1338_s2 + $0x158] sm:$0xff]  ;;  %v857_v41 = vld [vmem:[%s1338_s2 + $0x150] sm:$0xff] }
   0xf   :  { %1003 = vmatprep.subr.mxu1 %v830_v13  ;;  %966 = vmatpush3.msra.mxu0 %v30_v12  ;;  %v856_v42 = vld [vmem:[%s1338_s2 + $0x148] sm:$0xff]  ;;  %v855_v43 = vld [vmem:[%s1338_s2 + $0x140] sm:$0xff]  ;;  %v854_v44 = vld [vmem:[%s1338_s2 + $0x138] sm:$0xff] }
  0x10   :  { %1004 = vmatpush3.msra.mxu1 %v830_v13  ;;  %967 = vmatprep.subr.mxu0 %v29_v14  ;;  %v853_v45 = vld [vmem:[%s1338_s2 + $0x130] sm:$0xff]  ;;  %v852_v46 = vld [vmem:[%s1338_s2 + $0x128] sm:$0xff]  ;;  %v851_v47 = vld [vmem:[%s1338_s2 + $0x120] sm:$0xff] }
  0x11   :  { %1005 = vmatprep.subr.mxu1 %v829_v15  ;;  %968 = vmatpush3.msra.mxu0 %v29_v14  ;;  %v850_v48 = vld [vmem:[%s1338_s2 + $0x118] sm:$0xff]  ;;  %v849_v49 = vld [vmem:[%s1338_s2 + $0x110] sm:$0xff]  ;;  %v848_v50 = vld [vmem:[%s1338_s2 + $0x108] sm:$0xff] }
  0x12   :  { %1006 = vmatpush3.msra.mxu1 %v829_v15  ;;  %969 = vmatprep.subr.mxu0 %v28_v16  ;;  %v847_v51 = vld [vmem:[%s1338_s2 + $0x100] sm:$0xff]  ;;  %v837_v52 = vld [vmem:[%s1340_s1 + $0x10] sm:$0xff]  ;;  %v838_v56 = vld [vmem:[%s1340_s1 + $0x18] sm:$0xff] }
  0x13   :  { %1007 = vmatprep.subr.mxu1 %v828_v17  ;;  %970 = vmatpush3.msra.mxu0 %v28_v16  ;;  %v122_v60 = vld [vmem:[%s1340_s1] sm:$0xff]  ;;  %v123_v62 = vld [vmem:[%s1340_s1 + $0x8] sm:$0xff] }
  0x14   :  { %1008 = vmatpush3.msra.mxu1 %v828_v17  ;;  %971 = vmatprep.subr.mxu0 %v27_v18  ;;  %v863_v0 = vld [vmem:[%s1340_s1 + $0x20] sm:$0xff]  ;;  %v864_v3 = vld [vmem:[%s1340_s1 + $0x28] sm:$0xff] }
  0x15   :  { %1009 = vmatprep.subr.mxu1 %v827_v19  ;;  %972 = vmatpush3.msra.mxu0 %v27_v18  ;;  %v808_v16 = vld [vmem:[%s1341_s3 + $0x8] sm:$0xff] }
  0x16   :  { %1010 = vmatpush3.msra.mxu1 %v827_v19  ;;  %973 = vmatprep.subr.mxu0 %v26_v20 }
  0x17   :  { %1011 = vmatprep.subr.mxu1 %v826_v21  ;;  %974 = vmatpush3.msra.mxu0 %v26_v20  ;;  %v807_v20 = vld [vmem:[%s1341_s3] sm:$0xff] }
  0x18   :  { %1012 = vmatpush3.msra.mxu1 %v826_v21  ;;  %975 = vmatprep.subr.mxu0 %v25_v22 }
  0x19   :  { %1013 = vmatprep.subr.mxu1 %v825_v23  ;;  %976 = vmatpush3.msra.mxu0 %v25_v22 }
  0x1a   :  { %1014 = vmatpush3.msra.mxu1 %v825_v23  ;;  %977 = vmatprep.subr.mxu0 %v24_v24 }
  0x1b   :  { %1015 = vmatprep.subr.mxu1 %v824_v25  ;;  %978 = vmatpush3.msra.mxu0 %v24_v24 }
  0x1c   :  { %1016 = vmatpush3.msra.mxu1 %v824_v25  ;;  %979 = vmatprep.subr.mxu0 %v23_v26 }
  0x1d   :  { %1017 = vmatprep.subr.mxu1 %v823_v27  ;;  %980 = vmatpush3.msra.mxu0 %v23_v26 }
  0x1e   :  { %1018 = vmatpush3.msra.mxu1 %v823_v27  ;;  %981 = vmatprep.subr.mxu0 %v22_v28 }
  0x1f   :  { %1019 = vmatprep.subr.mxu1 %v822_v29  ;;  %982 = vmatpush3.msra.mxu0 %v22_v28 }
  0x20   :  { %1020 = vmatpush3.msra.mxu1 %v822_v29  ;;  %983 = vmatprep.subr.mxu0 %v21_v30 }
  0x21   :  { %1021 = vmatprep.subr.mxu1 %v821_v31  ;;  %984 = vmatpush3.msra.mxu0 %v21_v30 }
  0x22   :  { %985 = vmatprep.mubr.f32.mxu0 %v17_v32  ;;  %1022 = vmatpush3.msra.mxu1 %v821_v31 }
  0x23   :  { %1023 = vmatprep.mubr.f32.mxu1 %v17_v32  ;;  %986 = vmatmul.mubr.f32.vlgmr.msra.gmra.mxu0 %v18_v33 }
  0x24   :  { %1024 = vmatmul.mubr.f32.vlgmr.msra.gmra.mxu1 %v18_v33  ;;  %1057 = vmatprep.subr.mxu0 %v862_v34 }
  0x25   :  { %1026 = vmatprep.mubr.f32.mxu1 %v19_v35  ;;  %1058 = vmatpush3.msra.mxu0 %v862_v34 }
  0x26   :  { %988 = vmatprep.mubr.f32.mxu0 %v19_v35  ;;  %1059 = vmatprep.subr.mxu0 %v861_v36 }
  0x27   :  { %1060 = vmatpush3.msra.mxu0 %v861_v36 }
  0x28   :  { %1027 = vmatmul.mubr.f32.gmra.mxu1 %v20_v37  ;;  %1061 = vmatprep.subr.mxu0 %v860_v38 }
  0x29   :  { %989 = vmatmul.mubr.f32.gmra.mxu0 %v20_v37  ;;  %1033 = vmatprep.mubr.msk.f32.mxu1 %vm229_vm0, %v837_v52 }
  0x2a   :  { %1062 = vmatpush3.msra.mxu0 %v860_v38  ;;  %1089 = vmatprep.mubr.f32.mxu0 %v17_v32 }
  0x2b   :  { %1063 = vmatprep.subr.mxu0 %v859_v39 }
  0x2c   :  { %1064 = vmatpush3.msra.mxu0 %v859_v39 }
  0x2d   :  { %1065 = vmatprep.subr.mxu0 %v858_v40 }
  0x2e   :  { %1066 = vmatpush3.msra.mxu0 %v858_v40 }
  0x2f   :  { %1067 = vmatprep.subr.mxu0 %v857_v41 }
  0x30   :  { %1068 = vmatpush3.msra.mxu0 %v857_v41 }
  0x31   :  { %1069 = vmatprep.subr.mxu0 %v856_v42 }
  0x32   :  { %1070 = vmatpush3.msra.mxu0 %v856_v42 }
  0x33   :  { %1071 = vmatprep.subr.mxu0 %v855_v43 }
  0x34   :  { %1072 = vmatpush3.msra.mxu0 %v855_v43 }
  0x35   :  { %1073 = vmatprep.subr.mxu0 %v854_v44 }
  0x36   :  { %1074 = vmatpush3.msra.mxu0 %v854_v44 }
  0x37   :  { %1075 = vmatprep.subr.mxu0 %v853_v45 }
  0x38   :  { %1076 = vmatpush3.msra.mxu0 %v853_v45 }
  0x39   :  { %1077 = vmatprep.subr.mxu0 %v852_v46 }
  0x3a   :  { %1078 = vmatpush3.msra.mxu0 %v852_v46 }
  0x3b   :  { %1079 = vmatprep.subr.mxu0 %v851_v47 }
  0x3c   :  { %1080 = vmatpush3.msra.mxu0 %v851_v47 }
  0x3d   :  { %1081 = vmatprep.subr.mxu0 %v850_v48 }
  0x3e   :  { %1082 = vmatpush3.msra.mxu0 %v850_v48 }
  0x3f   :  { %1083 = vmatprep.subr.mxu0 %v849_v49 }
  0x40   :  { %1084 = vmatpush3.msra.mxu0 %v849_v49 }
  0x41   :  { %1085 = vmatprep.subr.mxu0 %v848_v50 }
  0x42   :  { %1086 = vmatpush3.msra.mxu0 %v848_v50 }
  0x43   :  { %1087 = vmatprep.subr.mxu0 %v847_v51 }
  0x44   :  { %1088 = vmatpush3.msra.mxu0 %v847_v51 }
  0x45   :  { %1090 = vmatmul.mubr.f32.vlgmr.msra.gmra.mxu0 %v18_v33 }
  0x46   :  { %1092 = vmatprep.mubr.f32.mxu0 %v19_v35 }
  0x49   :  { %1093 = vmatmul.mubr.f32.gmra.mxu0 %v20_v37 }
  0xe3   :  { %v987_v54 = vpop.f32.mrf.mxu0 }
  0xe4   :  { %v1025_v53 = vpop.f32.mrf.mxu1 }
  0xe5   :  { %1029 = vmatprep.subr.mxu1 %v1025_v53  ;;  %v103_v58 = vpop.f32.mrf.mxu0 }
  0xe6   :  { %v207_v55 = vpop.f32.mrf.mxu1  ;;  %1030 = vmatpush3.msra.mxu1 %v1025_v53 }
  0xe7   :  { %1031 = vmatprep.subr.mxu1 %v207_v55 }
  0xe8   :  { %v1028_v57 = vpop.f32.mrf.mxu1  ;;  %1032 = vmatpush3.msra.mxu1 %v207_v55 }
  0xe9   :  { %1036 = vmatprep.subr.mxu1 %v1028_v57  ;;  %1034 = vmatmul.mubr.msk.f32.vlgmr.msra.gmra.mxu1 %vm229_vm0, %v838_v56  ;;  %v990_v61 = vpop.f32.mrf.mxu0 }
  0xea   :  { %v217_v59 = vpop.f32.mrf.mxu1  ;;  %1037 = vmatpush3.msra.mxu1 %v1028_v57  ;;  %1040 = vmatprep.mubr.msk.f32.mxu1 %vm229_vm0, %v837_v52 }
  0xeb   :  { %1038 = vmatprep.subr.mxu1 %v217_v59  ;;  %v113_v63 = vpop.f32.mrf.mxu0 }
  0xec   :  { %1039 = vmatpush3.msra.mxu1 %v217_v59 }
  0xed   :  { %1043 = vmatprep.subr.mxu1 %v987_v54  ;;  %1041 = vmatmul.mubr.msk.f32.vlgmr.msra.gmra.mxu1 %vm229_vm0, %v838_v56 }
  0xee   :  { %1044 = vmatpush3.msra.mxu1 %v987_v54  ;;  %1047 = vmatprep.mubr.msk.f32.mxu1 %vm229_vm0, %v122_v60 }
  0xef   :  { %1045 = vmatprep.subr.mxu1 %v103_v58 }
  0xf0   :  { %1046 = vmatpush3.msra.mxu1 %v103_v58 }
  0xf1   :  { %1048 = vmatmul.mubr.msk.f32.vlgmr.msra.gmra.mxu1 %vm229_vm0, %v123_v62  ;;  %1050 = vmatprep.subr.mxu1 %v990_v61 }
  0xf2   :  { %1051 = vmatpush3.msra.mxu1 %v990_v61  ;;  %1054 = vmatprep.mubr.msk.f32.mxu1 %vm229_vm0, %v122_v60 }
  0xf3   :  { %1052 = vmatprep.subr.mxu1 %v113_v63 }
  0xf4   :  { %1053 = vmatpush3.msra.mxu1 %v113_v63 }
  0xf5   :  { %1055 = vmatmul.mubr.msk.f32.vlgmr.msra.gmra.mxu1 %vm229_vm0, %v123_v62 }
  0xf6   :  { %1099 = vmatprep.mubr.msk.f32.mxu1 %vm229_vm0, %v863_v0 }
 0x105   :  { %v1091_v1 = vpop.f32.mrf.mxu0 }
 0x106   :  { %1095 = vmatprep.subr.mxu1 %v1091_v1 }
 0x107   :  { %v625_v2 = vpop.f32.mrf.mxu0  ;;  %1096 = vmatpush3.msra.mxu1 %v1091_v1 }
 0x108   :  { %1097 = vmatprep.subr.mxu1 %v625_v2 }
 0x109   :  { %v1094_v4 = vpop.f32.mrf.mxu0  ;;  %1098 = vmatpush3.msra.mxu1 %v625_v2 }
 0x10a   :  { %1100 = vmatmul.mubr.msk.f32.vlgmr.msra.gmra.mxu1 %vm229_vm0, %v864_v3  ;;  %1102 = vmatprep.subr.mxu1 %v1094_v4 }
 0x10b   :  { %v635_v5 = vpop.f32.mrf.mxu0  ;;  %1103 = vmatpush3.msra.mxu1 %v1094_v4  ;;  %1106 = vmatprep.mubr.msk.f32.mxu1 %vm229_vm0, %v863_v0 }
 0x10c   :  { %1104 = vmatprep.subr.mxu1 %v635_v5 }
 0x10d   :  { %1105 = vmatpush3.msra.mxu1 %v635_v5 }
 0x10e   :  { %1107 = vmatmul.mubr.msk.f32.vlgmr.msra.gmra.mxu1 %vm229_vm0, %v864_v3 }
 0x1a9   :  { %v1035_v6 = vpop.f32.mrf.mxu1 }
 0x1ab   :  { %v302_v7 = vpop.f32.mrf.mxu1 }
 0x1ad   :  { %v1042_v8 = vpop.f32.mrf.mxu1 }
 0x1af   :  { %v377_v9 = vpop.f32.mrf.mxu1 }
 0x1b1   :  { %v1049_v10 = vpop.f32.mrf.mxu1 }
 0x1b2   :  { %v464_v14 = vadd.f32 %v1049_v10, %v1035_v6 }
 0x1b3   :  { %v458_v11 = vpop.f32.mrf.mxu1 }
 0x1b4   :  { %v459_v17 = vadd.f32 %v458_v11, %v302_v7 }
 0x1b5   :  { %v1056_v12 = vpop.f32.mrf.mxu1 }
 0x1b6   :  { %v539_v21 = vadd.f32 %v1056_v12, %v1042_v8 }
 0x1b7   :  { %v533_v13 = vpop.f32.mrf.mxu1 }
 0x1b8   :  { %v534_v25 = vadd.f32 %v533_v13, %v377_v9 }
 0x1ca   :  { %v1101_v15 = vpop.f32.mrf.mxu1 }
 0x1cb   :  { %v804_v18 = vadd.f32 %v1101_v15, %v464_v14 }
 0x1cc   :  { %v719_v19 = vpop.f32.mrf.mxu1 }
 0x1cd   :  { %v810_v22 = vadd.f32 %v808_v16, %v804_v18  ;;  %v803_v23 = vadd.f32 %v719_v19, %v459_v17 }
 0x1ce   :  { %v1108_v24 = vpop.f32.mrf.mxu1 }
 0x1cf   :  { %814 = vst [vmem:[%s1342_s4 + $0x8] sm:$0xff] %v810_v22  ;;  %v809_v26 = vadd.f32 %v807_v20, %v803_v23  ;;  %v806_v27 = vadd.f32 %v1108_v24, %v539_v21 }
 0x1d0   :  { %v794_v28 = vpop.f32.mrf.mxu1 }
 0x1d1   :  { %813 = vst [vmem:[%s1342_s4] sm:$0xff] %v809_v26  ;;  %v812_v29 = vadd.f32 %v808_v16, %v806_v27  ;;  %v805_v30 = vadd.f32 %v794_v28, %v534_v25 }
 0x1d3   :  { %816 = vst [vmem:[%s1342_s4 + $0x18] sm:$0xff] %v812_v29  ;;  %v811_v31 = vadd.f32 %v807_v20, %v805_v30 }
 0x1d5   :  { %815 = vst [vmem:[%s1342_s4 + $0x10] sm:$0xff] %v811_v31 }

</bundles_post_ra>
